<compile_context>
chip_gen: v6e
topology: v6e:2x2x1
jax: 0.10.0
libtpu: 0.0.40
codegen_flags: <defaults>
</compile_context>

<pallas_src>
import jax
import jax.numpy as jnp
from jax.experimental import pallas as pl
from jax.experimental.pallas import tpu as pltpu


def _round_up(a, b):
    return ((a + b - 1) // b) * b


def _choose_spatial_tile(HW2, N, tm_max, min_grid_blocks=8):
    """Spatial (lane) tile: multiple of 128, as large as possible, but with
    enough grid blocks that v7x's two TensorCores both get work."""
    assert tm_max % 128 == 0
    if HW2 <= 128:
        return HW2                                   # single full-extent block
    nb = pl.cdiv(HW2, tm_max)                        # blocks needed for the cap
    nb_mega = -(-min_grid_blocks // max(N, 1))       # ceil(min_blocks / N)
    nb = max(nb, min(nb_mega, HW2 // 128))           # never shrink below 128
    tile = max(128, (pl.cdiv(HW2, nb) // 128) * 128)
    return min(tile, HW2)


def _focus_conv_kernel(x_ref, w_ref, bias_ref, o_ref):
    # x_ref:    (K, T)   space-to-depth'd input tile (channels-first, lane = spatial)
    # w_ref:    (C2, K)  1x1 conv weight with BN scale folded in
    # bias_ref: (C2, 1)  folded BN bias (f32), broadcast across lanes
    # o_ref:    (C2, T)  lane-dense output tile
    acc = jnp.dot(w_ref[...], x_ref[...], preferred_element_type=jnp.float32)
    y = acc + bias_ref[...]
    # SiLU = y / (1 + exp(-y)); exp + approx reciprocal both go to the EUP slot.
    o_ref[...] = (y * pl.reciprocal(1.0 + jnp.exp(-y), approx=True)).astype(o_ref.dtype)


def focus_forward(x, conv_w, bn_gamma, bn_beta, bn_mean, bn_var, *,
                  eps=1e-5, tm=8192, compute_dtype=jnp.bfloat16, out_dtype=None):
    """x: (N, C1, H, W).  Returns (N, C2, H//2, W//2) in out_dtype (default x.dtype)."""
    N, C1, H, W = x.shape
    C2 = conv_w.shape[0]
    assert conv_w.shape == (C2, 4 * C1, 1, 1)
    assert H % 2 == 0 and W % 2 == 0, "Focus needs even spatial dims"
    assert tm % 128 == 0, "tm must be a multiple of 128 (lane width)"
    if out_dtype is None:
        out_dtype = x.dtype
    H2, W2 = H // 2, W // 2
    K = 4 * C1
    HW2 = H2 * W2

    # ---- Space-to-depth as a single fused XLA transpose+cast -> (N, K, H2*W2).
    # torch.cat order is [(dh=0,dw=0), (dh=1,dw=0), (dh=0,dw=1), (dh=1,dw=1)],
    # i.e. combined channel = (dw*2 + dh)*C1 + c  -> axis order (dw, dh, c).
    x6 = x.reshape(N, C1, H2, 2, W2, 2)                    # (N, c, h2, dh, w2, dw)
    xm = jnp.transpose(x6, (0, 5, 3, 1, 2, 4))             # (N, dw, dh, c, h2, w2)
    xm = xm.reshape(N, K, HW2).astype(compute_dtype)       # cast fuses into the copy

    # ---- Fold BatchNorm (inference form) into the 1x1 conv weight + a bias.
    scale = bn_gamma / jnp.sqrt(bn_var + eps)                         # (C2,)
    wm = (conv_w[:, :, 0, 0] * scale[:, None]).astype(compute_dtype)  # (C2, K)
    bias = (bn_beta - bn_mean * scale).reshape(C2, 1).astype(jnp.float32)

    tile = _choose_spatial_tile(HW2, N, tm)
    grid = (N, pl.cdiv(HW2, tile))        # ragged last block handled by Pallas

    out = pl.pallas_call(
        _focus_conv_kernel,
        out_shape=jax.ShapeDtypeStruct((N, C2, HW2), out_dtype),
        grid_spec=pltpu.PrefetchScalarGridSpec(
            num_scalar_prefetch=0,
            grid=grid,
            in_specs=[
                # (1, K, tile) block; leading batch dim squeezed out of the ref.
                pl.BlockSpec((None, K, tile), lambda n, j: (n, 0, j)),
                pl.BlockSpec((C2, K), lambda n, j: (0, 0)),
                pl.BlockSpec((C2, 1), lambda n, j: (0, 0)),
            ],
            out_specs=pl.BlockSpec((None, C2, tile), lambda n, j: (n, 0, j)),
        ),
        compiler_params=pltpu.CompilerParams(
            dimension_semantics=("parallel", "parallel")),
    )(xm, wm, bias)

    # (N, C2, HW2) -> (N, C2, H2, W2): contiguous reshape, no extra HBM pass.
    return out.reshape(N, C2, H2, W2)


def _reference(x, conv_w, bn_gamma, bn_beta, bn_mean, bn_var, eps=1e-5):
    # Pure-JAX f32 reference mirroring the PyTorch module (eval-mode BN).
    g0 = x[..., ::2, ::2]
    g1 = x[..., 1::2, ::2]
    g2 = x[..., ::2, 1::2]
    g3 = x[..., 1::2, 1::2]
    y = jnp.concatenate([g0, g1, g2, g3], axis=1)              # (N, 4C1, H2, W2)
    w = conv_w[:, :, 0, 0]                                     # (C2, 4C1)
    conv = jnp.einsum("nchw,oc->nohw", y, w)
    scale = bn_gamma / jnp.sqrt(bn_var + eps)
    z = (conv - bn_mean[None, :, None, None]) * scale[None, :, None, None] \
        + bn_beta[None, :, None, None]
    return z * jax.nn.sigmoid(z)


def _make_params(key, N, C1, H, W, C2):
    k_x, k_w, k_g, k_b, k_m, k_v = jax.random.split(key, 6)
    x = jax.random.normal(k_x, (N, C1, H, W), dtype=jnp.float32)
    conv_w = jax.random.normal(k_w, (C2, 4 * C1, 1, 1), dtype=jnp.float32) * 0.1
    bn_gamma = 1.0 + 0.1 * jax.random.normal(k_g, (C2,), dtype=jnp.float32)
    bn_beta = 0.1 * jax.random.normal(k_b, (C2,), dtype=jnp.float32)
    bn_mean = 0.1 * jax.random.normal(k_m, (C2,), dtype=jnp.float32)
    bn_var = jnp.abs(1.0 + 0.1 * jax.random.normal(k_v, (C2,), dtype=jnp.float32))
    return x, conv_w, bn_gamma, bn_beta, bn_mean, bn_var


if __name__ == "__main__":
    key = jax.random.PRNGKey(0)
    k1, k2 = jax.random.split(key)

    # --- Primary check: small shapes, default (input-dtype) output. ---
    N, C1, H, W, C2 = 2, 4, 16, 16, 8
    args = _make_params(k1, N, C1, H, W, C2)
    out = jax.block_until_ready(focus_forward(*args))
    ref = _reference(*args)
    assert out.shape == (N, C2, H // 2, W // 2), out.shape
    # bf16 operands / f32 accumulation: relaxed tolerance vs. the f32 reference.
    assert jnp.allclose(out, ref, atol=2e-2, rtol=2e-2), "mismatch vs reference (f32 out)"

    # --- bf16-output fast path (halves HBM writeback; review item). ---
    out_bf16 = jax.block_until_ready(
        focus_forward(*args, out_dtype=jnp.bfloat16))
    assert out_bf16.dtype == jnp.bfloat16
    assert jnp.allclose(out_bf16.astype(jnp.float32), ref, atol=3e-2, rtol=3e-2), \
        "mismatch vs reference (bf16 out)"

    # --- Ragged-edge check: HW2 not a multiple of the tile (no pad / no slice). ---
    N2, C1b, Hb, Wb, C2b = 1, 3, 30, 30, 16          # HW2 = 225, tile = 128 -> 2 blocks
    args2 = _make_params(k2, N2, C1b, Hb, Wb, C2b)
    out2 = jax.block_until_ready(focus_forward(*args2, tm=8192))
    ref2 = _reference(*args2)
    assert out2.shape == (N2, C2b, Hb // 2, Wb // 2), out2.shape
    assert jnp.allclose(out2, ref2, atol=2e-2, rtol=2e-2), "mismatch vs reference (ragged)"

    print("KERNEL_OK")
</pallas_src>

<mosaic_0001>
module attributes {stable_mosaic.version = 11 : i64} {
  func.func @_focus_conv_kernel(%arg0: i32, %arg1: i32, %arg2: memref<1x16x64xbf16, #tpu.memory_space<vmem>>, %arg3: memref<8x16xbf16, #tpu.memory_space<vmem>>, %arg4: memref<8x1xf32, #tpu.memory_space<vmem>>, %arg5: memref<1x8x64xf32, #tpu.memory_space<vmem>>) attributes {dimension_semantics = [#tpu.dimension_semantics<parallel>, #tpu.dimension_semantics<parallel>], iteration_bounds = array<i64: 2, 1>, scalar_prefetch = 0 : i64, scratch_operands = 0 : i64, tpu.core_type = #tpu.core_type<tc>, window_params = [{transform_indices = @transform_0, window_bounds = array<i64: 1, 16, 64>}, {pipeline_mode = #tpu.pipeline_mode<synchronous>, transform_indices = @transform_1, window_bounds = array<i64: 8, 16>}, {pipeline_mode = #tpu.pipeline_mode<synchronous>, transform_indices = @transform_2, window_bounds = array<i64: 8, 1>}, {transform_indices = @transform_3, window_bounds = array<i64: 1, 8, 64>}]} {
    %c0 = arith.constant 0 : index
    %c0_0 = arith.constant 0 : index
    %0 = vector.load %arg3[%c0, %c0_0] : memref<8x16xbf16, #tpu.memory_space<vmem>>, vector<8x16xbf16>
    %c0_1 = arith.constant 0 : index
    %c0_2 = arith.constant 0 : index
    %c0_3 = arith.constant 0 : index
    %1 = vector.load %arg2[%c0_1, %c0_2, %c0_3] : memref<1x16x64xbf16, #tpu.memory_space<vmem>>, vector<1x16x64xbf16>
    %2 = vector.shape_cast %1 : vector<1x16x64xbf16> to vector<16x64xbf16>
    %cst = arith.constant dense<0.000000e+00> : vector<8x64xf32>
    %3 = tpu.matmul %0, %2, %cst {dimension_numbers = #tpu.dot_dimension_numbers<[1], [0], [0], [1], [0, 0, 1, 1], [], []>} : vector<8x16xbf16>, vector<16x64xbf16>, vector<8x64xf32> -> vector<8x64xf32>
    %c0_4 = arith.constant 0 : index
    %c0_5 = arith.constant 0 : index
    %4 = vector.load %arg4[%c0_4, %c0_5] : memref<8x1xf32, #tpu.memory_space<vmem>>, vector<8x1xf32>
    %5 = vector.broadcast %4 : vector<8x1xf32> to vector<8x64xf32>
    %6 = arith.addf %3, %5 : vector<8x64xf32>
    %cst_6 = arith.constant 0.000000e+00 : f32
    %7 = vector.broadcast %cst_6 : f32 to vector<8x64xf32>
    %8 = arith.subf %7, %6 : vector<8x64xf32>
    %9 = math.exp %8 : vector<8x64xf32>
    %cst_7 = arith.constant 1.000000e+00 : f32
    %10 = vector.broadcast %cst_7 : f32 to vector<8x64xf32>
    %11 = arith.addf %10, %9 : vector<8x64xf32>
    %12 = tpu.reciprocal %11 {approx = true} : vector<8x64xf32> -> vector<8x64xf32>
    %13 = arith.mulf %6, %12 : vector<8x64xf32>
    %c0_8 = arith.constant 0 : index
    %c0_9 = arith.constant 0 : index
    %c0_10 = arith.constant 0 : index
    %14 = vector.load %arg5[%c0_8, %c0_9, %c0_10] : memref<1x8x64xf32, #tpu.memory_space<vmem>>, vector<1x8x64xf32>
    %15 = vector.shape_cast %14 : vector<1x8x64xf32> to vector<8x64xf32>
    %16 = vector.shape_cast %13 : vector<8x64xf32> to vector<1x8x64xf32>
    tpu.vector_store %arg5[%c0_8, %c0_9, %c0_10], %16 {strides = array<i32>} : memref<1x8x64xf32, #tpu.memory_space<vmem>>, vector<1x8x64xf32>,
    return
  }
  func.func @transform_0(%arg0: i32, %arg1: i32) -> (i32, i32, i32) {
    %c0_i32 = arith.constant 0 : i32
    %c0_i32_0 = arith.constant 0 : i32
    return %arg0, %c0_i32, %arg1 : i32, i32, i32
  }
  func.func @transform_1(%arg0: i32, %arg1: i32) -> (i32, i32) {
    %c0_i32 = arith.constant 0 : i32
    %c0_i32_0 = arith.constant 0 : i32
    %c0_i32_1 = arith.constant 0 : i32
    return %c0_i32, %c0_i32_0 : i32, i32
  }
  func.func @transform_2(%arg0: i32, %arg1: i32) -> (i32, i32) {
    %c0_i32 = arith.constant 0 : i32
    %c0_i32_0 = arith.constant 0 : i32
    %c0_i32_1 = arith.constant 0 : i32
    return %c0_i32, %c0_i32_0 : i32, i32
  }
  func.func @transform_3(%arg0: i32, %arg1: i32) -> (i32, i32, i32) {
    %c0_i32 = arith.constant 0 : i32
    %c0_i32_0 = arith.constant 0 : i32
    return %arg0, %c0_i32, %arg1 : i32, i32, i32
  }
}

</mosaic_0001>

<bundles_post_ra>
// kernel: tpu_custom_call.1
= control target key start
LH: loop header
LB: loop body
LE: loop exit
PB: predicated region body
PF: predicated region fallthrough
CT: control target
= control target key end

     0   :  { %8 = vsyncpa [#allocation3], 0  ;;  %s747_s0 = inlined_call_operand.hbm [shape: bf16[2,16,64], index: 0, kind: input, shape index: {}]   ;;  %s748_s1 = inlined_call_operand.vmem [shape: bf16[8,16], index: 1, kind: input, shape index: {}]   ;;  %s749_s2 = inlined_call_operand.vmem [shape: f32[8,1], index: 2, kind: input, shape index: {}]   ;;  %s750_s3 = inlined_call_operand.hbm [shape: f32[2,8,64], index: 3, kind: output, shape index: {}]  }
   0x1   :  { %10 = vsyncpa [#allocation3 + $0x1], 0 }
   0x2   :  { %11 = vsyncpa [#allocation4], 0 }
   0x3   :  { %13 = vsyncpa [#allocation4 + $0x1], 0  ;;  %s605_s12 = smov 0   ;;  %s607_s13 = smov 0  }
   0x4   :  { %s609_s14 = smov 0   ;;  %s611_s15 = smov 0  }
   0x5   :  { %s613_s16 = smov 0   ;;  %s615_s17 = smov 0  }
   0x6 LB: > { %s370_s18 = sadd.s32 4294967295, %s576_s17   ;;  %s371_s19 = sadd.s32 4294967294, %s576_s17   ;;  %s576_s17 = sphi %s615_s17, %s19_s17   ;;  %s572_s16 = sphi %s613_s16, %s761_s16   ;;  %s568_s15 = sphi %s611_s15, %s760_s15   ;;  %s564_s14 = sphi %s609_s14, %s759_s14   ;;  %s560_s13 = sphi %s607_s13, %s758_s13   ;;  %s556_s12 = sphi %s605_s12, %s757_s12  }
   0x7   : > { %s31_s20 = sadd.s32 1, %s572_s16  ;;  %s40_s21 = sadd.s32 1, %s564_s14 }
   0x8   : > { %p33_p0 = scmp.ge.s32.totalorder %s31_s20, 2  ;;  %p47_p1 = scmp.ne.s32.totalorder %s564_s14, %s560_s13 }
   0x9   : > { %p48_p2 = scmp.eq.s32.totalorder %s576_s17, 0  ;;  %p53_p3 = scmp.ne.s32.totalorder %s560_s13, %s556_s12 }
   0xa   : > { %s763_s20 = smov (%p33_p0, %s31_s20), 0  ;;  %p54_p5 = scmp.eq.s32.totalorder %s370_s18, 0 }
   0xb   : > { %p646_p4 = por %p48_p2, %p47_p1  ;;  %s35_s23 = ssub.s32 %s572_s16, %s763_s20 }
   0xc   : > { %p121_p6 = scmp.eq.s32.totalorder %s370_s18, 1  ;;  %p38_p7 = scmp.eq.s32.totalorder %s35_s23, 0 }
   0xd   : > { %p652_p8 = por %p54_p5, %p53_p3  ;;  %p127_p10 = scmp.eq.s32.totalorder %s371_s19, 1 }
   0xe   : > { %p656_p9 = por %p121_p6, %p47_p1  ;;  %p407_p13 = scmp.lt.s32.totalorder %s576_s17, 2 }
   0xf   : > { %s661_s26 = scalar_select %p38_p7, %s564_s14, %s40_s21  }
  0x10   : > { %p663_p11 = por %p127_p10, %p53_p3  ;;  %s153_s28 = sand.u32 1, %s564_s14  }
  0x11   : > { %s374_s29 = sshll.u32 %s153_s28, 3  ;;  %s386_s30 = sshll.u32 %s572_s16, 7 }
  0x12   : > { %s164_s6 = scalar_lea.hbm %s747_s0, %s386_s30  ;;  %s157_s7 = scalar_lea.vmem [#allocation2], %s374_s29 }
  0x13   : > { %s165_s8 = sshll.u32 %s157_s7, 4  ;;  %p676_p0 = pnand %p407_p13, %p646_p4  ;;  %s166_s8 = int_to_ptr.vmem [resolvable:$true] %s165_s8 }
  0x14   : > { %p377_p1 = scmp.ge.s32.totalorder %s576_s17, 1  ;;  %s154_s10 = scalar_lea.sflag [#allocation3], %s153_s28 }
  0x15   : > { %p470_p2 = pneg %p676_p0  ;;  %s481_s11 = scalar_lea.vmem %s166_s8, 128 }
  0x16   : > { %p482_p3 = scmp.ne.s32.totalorder %s166_s8, %s481_s11  ;;  %s578_s18 = smov [#allocation2]  }
  0x17   : > { %s486_s19 = sshll.u32 %s578_s18, 4  ;;  %s487_s19 = int_to_ptr.vmem [resolvable:$false] %s486_s19 }
  0x18   : > { %p484_p5 = pnand %p482_p3, %p470_p2  ;;  %s488_s21 = scalar_lea.vmem %s487_s19, 256 }
  0x19   : > { %p489_p7 = scmp.lt.s32.totalorder %s166_s8, %s487_s19  ;;  %p490_p10 = scmp.lt.s32.totalorder %s488_s21, %s481_s11 }
  0x1a   : > { %p485_p6 = pneg %p484_p5 }
  0x1b   : > { %p491_p12 = por %p490_p10, %p489_p7 }
  0x1d   : > { %p492_p4 = pnand %p491_p12, %p485_p6 }
  0x1f   : > { %495 = shalt.err (!%p492_p4)
}
  0x20   : > { %s579_s22 = smov 64   ;;  %s580_s23 = smov 4  }
  0x21   : > { %402 = dma.hbm_to_vmem [thread:$0]  (!%p676_p0), %s164_s6, 128, %s166_s8, %s154_s10, %s579_s22, %s579_s22, %s580_s23  }
  0x22   : > { %p173_p13 = scmp.lt.s32.totalorder %s576_s17, 3 }
  0x24   : > { %p174_p2 = pnand %p377_p1, %p173_p13 }
  0x25   : > { %s689_s28 = sand.u32 (!%p174_p2), 1, %s560_s13  }
  0x26   : > { %177 = sbr.rel (%p174_p2) target bundleno = 293 (0x125), region = 32  ;;  %s378_s29 = sshll.u32 (!%p174_p2), %s689_s28, 3 }
  0x27   : > { %s180_s30 = scalar_lea.sflag (!%p174_p2), [#allocation3], %s689_s28  ;;  %s183_s4 = scalar_lea.vmem (!%p174_p2), [#allocation2], %s378_s29 }
  0x2b   : > { %547 = dma.done.wait (%p652_p8), %s180_s30, 128  }
  0x2c   : > { %549 = vsyncadd (%p652_p8), %s180_s30, 4294967168  ;;  %v581_v0 = vmov 0.0   ;;  %vm582_vm0 = vmmov 0   ;;  %v583_v1 = vmov 0   ;;  %v463_v2 = vld [vmem:[%s183_s4] sm:$0xff]   ;;  %vm222_vm1 = vcmask 130048  }
  0x2d   : > { %389 = vmatprep.subr.bf16.mxu0 %v581_v0  ;;  %391 = vmatprep.mubr.msk.bf16.mxu0 %vm582_vm0, %v581_v0  ;;  %v210_v3 = vld [vmem:[%s749_s2] sm:$0xff]  ;;  %s383_s24 = sshll.u32 %s568_s15, 7  ;;  %s205_s9 = scalar_lea.vmem [#allocation5], %s378_s29  ;;  %vm272_vm2 = vcmask 523264  }
  0x2e   : > { %462 = vset.pattern.permute.xlu0 %v583_v1  ;;  %390 = vmatpush3.bf16.msra.mxu0 %v463_v2  ;;  %v207_v4 = vld [vmem:[%s748_s1] sm:$0xf]  ;;  %s289_s10 = sshll.u32 %s205_s9, 4  ;;  %s287_s19 = scalar_lea.hbm %s750_s3, %s383_s24  ;;  %s290_s10 = int_to_ptr.vmem [resolvable:$true] %s289_s10 }
  0x2f   : > { %213 = vperm.xlu0 %462, %v210_v3   ;;  %s275_s21 = scalar_lea.sflag [#allocation4], %s689_s28  ;;  %s496_s22 = scalar_lea.vmem %s290_s10, 128 }
  0x30   : > { %p497_p8 = scmp.ne.s32.totalorder %s290_s10, %s496_s22  ;;  %s584_s23 = smov [#allocation5]  }
  0x31   : > { %392 = vmatmul.mubr.msk.bf16.vlgmr.msra.gmra.mxu0 %vm222_vm1, %v207_v4  ;;  %s500_s15 = sshll.u32 %s584_s23, 4  ;;  %s501_s15 = int_to_ptr.vmem [resolvable:$false] %s500_s15 }
  0x32   : > { %p498_p12 = pnand %p497_p8, %p656_p9  ;;  %s502_s29 = scalar_lea.vmem %s501_s15, 256 }
  0x33   : > { %p503_p1 = scmp.lt.s32.totalorder %s290_s10, %s501_s15  ;;  %p504_p3 = scmp.lt.s32.totalorder %s502_s29, %s496_s22 }
  0x34   : > { %p499_p0 = pneg %p498_p12 }
  0x35   : > { %p505_p5 = por %p504_p3, %p503_p1 }
  0x37   : > { %p506_p6 = pnand %p505_p5, %p499_p0 }
  0xaa   : > { %v214_v5 = vpop.permute.xlu0 %213 }
  0xf1   : > { %v260_v6 = vpop.f32.mrf.mxu0 }
  0xf2   : > { %v261_v7 = vadd.f32 %v260_v6, %v214_v5 }
  0xf3   : > { %v393_v8 = vpop.f32.mrf.mxu0 }
  0xf4   : > { %v266_v9 = vsub.f32 0.0, %v261_v7 }
  0xf5   : > { %v263_v10 = vpop.f32.mrf.mxu0 }
  0xf6   : > { %v267_v11 = vmul.f32 1.442695, %v266_v9 }
  0xf7   : > { %v394_v12 = vpop.f32.mrf.mxu0 }
  0xf8   : > { %464 = vpow2.f32 %v267_v11 }
 0x105   : > { %v465_v13 = vpop.eup %464 }
 0x106   : > { %v269_v14 = vadd.f32 1.0, %v465_v13 }
 0x108   : > { %466 = vrcp.f32 %v269_v14 }
 0x115   : > { %v467_v15 = vpop.eup %466 }
 0x116   : > { %v271_v16 = vmul.f32 %v467_v15, %v261_v7 }
 0x118   : > { %273 = vst.msk [vmem:[%s205_s9] sm:$0xff] %vm272_vm2, %v271_v16 }
 0x119   : > { %509 = shalt.err (!%p506_p6)
}
 0x11a   : > { %s510_s30 = scalar_lea.hbm %s287_s19, 128  ;;  %s514_s5 = scalar_lea.hbm %s750_s3, 256 }
 0x11b   : > { %p511_p7 = scmp.ne.s32.totalorder %s287_s19, %s510_s30  ;;  %p515_p13 = scmp.lt.s32.totalorder %s287_s19, %s750_s3 }
 0x11c   : > { %p516_p2 = scmp.lt.s32.totalorder %s514_s5, %s510_s30 }
 0x11d   : > { %p512_p10 = pnand %p511_p7, %p656_p9 }
 0x11e   : > { %p517_p8 = por %p516_p2, %p515_p13 }
 0x11f   : > { %p513_p4 = pneg %p512_p10 }
 0x121   : > { %p518_p12 = pnand %p517_p8, %p513_p4 }
 0x123   : > { %521 = shalt.err (!%p518_p12)
}
 0x124   : > { %397 = dma.vmem_to_hbm [thread:$0]  (%p656_p9), %s290_s10, 128, %s287_s19, %s275_s21  }
 0x125 PF: > { %s301_s8 = sand.u32 1, %s556_s12   ;;  %p756_p0 = scmp.ge.s32.totalorder %s576_s17, 2 }
 0x126   : > { %s302_s24 = scalar_lea.sflag [#allocation4], %s301_s8 }
 0x127   : > { %p404_p1 = pnand %p756_p0, %p663_p11 }
 0x129   : > { %p405_p3 = pneg %p404_p1 }
 0x12b   : > { %551 = dma.done.wait (%p405_p3), %s302_s24, 128  }
 0x12c   : > { %553 = vsyncadd (%p405_p3), %s302_s24, 4294967168  ;;  %s19_s17 = sadd.s32 1, %s576_s17   ;;  %s757_s12 = smov %s560_s13 }
 0x12d   : > { %p16_p5 = scmp.ge.s32.totalorder %s19_s17, 4   ;;  %s758_s13 = smov %s564_s14 }
 0x12e   : > { %s759_s14 = smov %s661_s26  ;;  %s760_s15 = smov %s572_s16 }
 0x12f   : > { %s761_s16 = smov %s763_s20  ;;  %18 = sbr.rel (!%p16_p5) target bundleno = 6 (0x6), region = 77 }
 0x134   :  { %307 = vsyncpa [#allocation3], 1 }
 0x135   :  { %309 = vsyncpa [#allocation3 + $0x1], 1 }
 0x136   :  { %310 = vsyncpa [#allocation4], 1 }
 0x137   :  { %312 = vsyncpa [#allocation4 + $0x1], 1 }

</bundles_post_ra>
